<compile_context>
chip_gen: v7x
topology: tpu7x:2x2x1
jax: 0.10.0
libtpu: 0.0.40
codegen_flags: <defaults>
</compile_context>

<pallas_src>
import functools
import math

import jax
import jax.numpy as jnp
from jax.experimental import pallas as pl
from jax.experimental.pallas import tpu as pltpu


def _entropic_loss_kernel(x_ref, o_ref, acc_ref, *, a, tn, n_valid, inv_n,
                          needs_mask):
    """grid = (F_tiles, N_tiles); axis 1 (N) is the innermost reduction axis.

    acc_ref: (8, f_tile) f32 VMEM scratch carrying the running per-lane sum of
    exp(-a*x) over N, kept un-reduced along the sublane axis until the epilogue.
    """
    i = pl.program_id(1)  # reduction (N) step

    @pl.when(i == 0)
    def _():
        acc_ref[...] = jnp.zeros_like(acc_ref)

    x = x_ref[...].astype(jnp.float32)              # (tn, f_tile)
    u = jnp.exp(x * jnp.float32(-a))                # exp(-a*x) (= -exp_utility)

    if needs_mask:
        # Mask rows past the true N (ragged last tile reads undefined data).
        row = i * tn + jax.lax.broadcasted_iota(jnp.int32, x.shape, 0)
        u = jnp.where(row < n_valid, u, 0.0)

    # (tn, f_tile) -> (tn//8, 8, f_tile): summing over axis 0 is pure vreg adds
    # (VALU); the cross-sublane reduce is deferred to the epilogue.
    acc_ref[...] += u.reshape(tn // 8, 8, u.shape[-1]).sum(axis=0)

    @pl.when(i == pl.num_programs(1) - 1)
    def _():
        # One 8->1 sublane reduce per F tile, fused with the 1/N scale.
        total = acc_ref[...].sum(axis=0, keepdims=True)
        o_ref[...] = (total * jnp.float32(inv_n)).astype(o_ref.dtype)


def entropic_loss(pnl: jax.Array, a: float = 1.0, *,
                  vmem_budget_bytes: int = 8 * 1024 * 1024) -> jax.Array:
    """Pallas implementation of EntropicLoss(a).forward(pnl).

    Args:
        pnl: array of shape (N, *): the profit-and-loss distribution.
        a:   risk aversion coefficient (> 0), static Python float.

    Returns:
        Array of shape (*): mean over axis 0 of exp(-a * pnl).
    """
    if not a > 0:
        raise ValueError("Risk aversion coefficient should be positive.")

    n = pnl.shape[0]
    trailing = pnl.shape[1:]
    f = math.prod(trailing) if trailing else 1
    x2d = pnl.reshape(n, f)

    # Lane-pack narrow trailing shapes: fold part of N into the lane axis so
    # every vreg / DMA / store uses all 128 lanes. The k lane-groups are summed
    # in the wrapper afterwards.
    pack_k = 1
    if 0 < f < 128 and 128 % f == 0:
        k = 128 // f
        if n % k == 0 and n >= k:
            pack_k = k
            x2d = x2d.reshape(n // k, k * f)

    n_rows, f_eff = x2d.shape

    # Lane tile: a multiple of 128 that divides F (lane-dense, unmasked stores);
    # otherwise fall back to the full (possibly non-128-multiple) F extent.
    if f_eff % 128 == 0:
        f_tile = math.gcd(f_eff, 512)
    else:
        f_tile = f_eff

    # Reduction tile from a VMEM budget (double-buffered input window).
    itemsize = jnp.dtype(x2d.dtype).itemsize
    tn = vmem_budget_bytes // (2 * f_tile * itemsize)
    tn = max(8, (tn // 8) * 8)
    tn = min(tn, 1024)                            # big enough to amortize ~0.35us/step
    n_rows_pad8 = ((n_rows + 7) // 8) * 8
    tn = min(tn, n_rows_pad8)                     # both multiples of 8

    num_f = f_eff // f_tile
    num_n = pl.cdiv(n_rows, tn)
    needs_mask = (n_rows % tn) != 0

    kernel = functools.partial(
        _entropic_loss_kernel,
        a=float(a),
        tn=int(tn),
        n_valid=int(n_rows),
        inv_n=1.0 / float(n),
        needs_mask=bool(needs_mask),
    )

    cost = pl.CostEstimate(
        flops=2 * n * f,
        transcendentals=n * f,
        bytes_accessed=n * f * itemsize + f_eff * 4,
    )

    out2d = pl.pallas_call(
        kernel,
        out_shape=jax.ShapeDtypeStruct((1, f_eff), jnp.float32),
        grid_spec=pltpu.PrefetchScalarGridSpec(
            num_scalar_prefetch=0,
            grid=(num_f, num_n),                  # F (parallel) leading, N (reduction) last
            in_specs=[pl.BlockSpec((tn, f_tile), lambda j, i: (i, j))],
            out_specs=pl.BlockSpec((1, f_tile), lambda j, i: (0, j)),
            scratch_shapes=[pltpu.VMEM((8, f_tile), jnp.float32)],
        ),
        compiler_params=pltpu.CompilerParams(
            dimension_semantics=("parallel", "arbitrary"),
            vmem_limit_bytes=32 * 1024 * 1024,
        ),
        cost_estimate=cost,
    )(x2d)

    if pack_k > 1:
        out_flat = out2d.reshape(pack_k, f).sum(axis=0)
    else:
        out_flat = out2d.reshape(f)

    return out_flat.astype(pnl.dtype).reshape(trailing)


def _reference(pnl: jax.Array, a: float) -> jax.Array:
    x = pnl.astype(jnp.float32)
    exp_utility = -jnp.exp(-a * x)
    return (-jnp.mean(exp_utility, axis=0)).astype(pnl.dtype)


# TODO(synk): HedgeLoss.cash() (bisection search) is not implemented; only forward().

if __name__ == "__main__":
    ok = True

    # Case 1: small, narrow trailing shape (exercises lane packing F=64 -> 128).
    key = jax.random.PRNGKey(0)
    N, C, W = 16, 4, 16
    pnl1 = jax.random.normal(key, (N, C, W), dtype=jnp.float32)
    for a in (1.0, 2.0):
        out = jax.block_until_ready(entropic_loss(pnl1, a))
        ref = _reference(pnl1, a)
        if out.shape != (C, W) or not jnp.allclose(out, ref, rtol=1e-5, atol=1e-5):
            ok = False

    # Case 2: larger N (multiple reduction tiles + masked ragged last tile,
    # F = 256 lane-dense tiles).
    pnl2 = jax.random.normal(jax.random.PRNGKey(0), (1030, 4, 64), dtype=jnp.float32)
    out = jax.block_until_ready(entropic_loss(pnl2, 0.5))
    ref = _reference(pnl2, 0.5)
    if out.shape != (4, 64) or not jnp.allclose(out, ref, rtol=1e-4, atol=1e-4):
        ok = False

    print("KERNEL_OK" if ok else "KERNEL_MISMATCH")
</pallas_src>

<mosaic_0001>
module attributes {stable_mosaic.version = 11 : i64} {
  func.func @_entropic_loss_kernel(%arg0: i32, %arg1: i32, %arg2: memref<8x128xf32, #tpu.memory_space<vmem>>, %arg3: memref<1x128xf32, #tpu.memory_space<vmem>>, %arg4: memref<8x128xf32, #tpu.memory_space<vmem>>) attributes {dimension_semantics = [#tpu.dimension_semantics<parallel>, #tpu.dimension_semantics<arbitrary>], iteration_bounds = array<i64: 1, 1>, scalar_prefetch = 0 : i64, scratch_operands = 1 : i64, tpu.core_type = #tpu.core_type<tc>, window_params = [{transform_indices = @transform_0, window_bounds = array<i64: 8, 128>}, {transform_indices = @transform_1, window_bounds = array<i64: 1, 128>}]} {
    %c0_i32 = arith.constant 0 : i32
    %0 = arith.cmpi eq, %arg1, %c0_i32 : i32
    %1 = arith.extui %0 : i1 to i32
    %c0_i32_0 = arith.constant 0 : i32
    %2 = arith.cmpi ne, %1, %c0_i32_0 : i32
    scf.if %2 {
      %cst_9 = arith.constant 0.000000e+00 : f32
      %15 = vector.broadcast %cst_9 : f32 to vector<8x128xf32>
      %c0_10 = arith.constant 0 : index
      %c0_11 = arith.constant 0 : index
      %16 = vector.load %arg4[%c0_10, %c0_11] : memref<8x128xf32, #tpu.memory_space<vmem>>, vector<8x128xf32>
      tpu.vector_store %arg4[%c0_10, %c0_11], %15 {strides = array<i32>} : memref<8x128xf32, #tpu.memory_space<vmem>>, vector<8x128xf32>,
    } else {
    }
    %c0 = arith.constant 0 : index
    %c0_1 = arith.constant 0 : index
    %3 = vector.load %arg2[%c0, %c0_1] : memref<8x128xf32, #tpu.memory_space<vmem>>, vector<8x128xf32>
    %cst = arith.constant -1.000000e+00 : f32
    %4 = vector.broadcast %cst : f32 to vector<8x128xf32>
    %5 = arith.mulf %3, %4 : vector<8x128xf32>
    %6 = math.exp %5 : vector<8x128xf32>
    %c0_2 = arith.constant 0 : index
    %c0_3 = arith.constant 0 : index
    %7 = vector.load %arg4[%c0_2, %c0_3] : memref<8x128xf32, #tpu.memory_space<vmem>>, vector<8x128xf32>
    %8 = vector.shape_cast %6 : vector<8x128xf32> to vector<1x8x128xf32>
    %cst_4 = arith.constant dense<0.000000e+00> : vector<8x128xf32>
    %9 = vector.multi_reduction <add>, %8, %cst_4 [0] : vector<1x8x128xf32> to vector<8x128xf32>
    %10 = arith.addf %7, %9 : vector<8x128xf32>
    %c0_5 = arith.constant 0 : index
    %c0_6 = arith.constant 0 : index
    %11 = vector.load %arg4[%c0_5, %c0_6] : memref<8x128xf32, #tpu.memory_space<vmem>>, vector<8x128xf32>
    tpu.vector_store %arg4[%c0_5, %c0_6], %10 {strides = array<i32>} : memref<8x128xf32, #tpu.memory_space<vmem>>, vector<8x128xf32>,
    %c0_i32_7 = arith.constant 0 : i32
    %12 = arith.cmpi eq, %arg1, %c0_i32_7 : i32
    %13 = arith.extui %12 : i1 to i32
    %c0_i32_8 = arith.constant 0 : i32
    %14 = arith.cmpi ne, %13, %c0_i32_8 : i32
    scf.if %14 {
      %c0_9 = arith.constant 0 : index
      %c0_10 = arith.constant 0 : index
      %15 = vector.load %arg4[%c0_9, %c0_10] : memref<8x128xf32, #tpu.memory_space<vmem>>, vector<8x128xf32>
      %cst_11 = arith.constant dense<0.000000e+00> : vector<128xf32>
      %16 = vector.multi_reduction <add>, %15, %cst_11 [0] : vector<8x128xf32> to vector<128xf32>
      %17 = vector.shape_cast %16 : vector<128xf32> to vector<1x128xf32>
      %cst_12 = arith.constant 6.250000e-02 : f32
      %18 = vector.broadcast %cst_12 : f32 to vector<1x128xf32>
      %19 = arith.mulf %17, %18 : vector<1x128xf32>
      %c0_13 = arith.constant 0 : index
      %c0_14 = arith.constant 0 : index
      %20 = vector.load %arg3[%c0_13, %c0_14] : memref<1x128xf32, #tpu.memory_space<vmem>>, vector<1x128xf32>
      tpu.vector_store %arg3[%c0_13, %c0_14], %19 {strides = array<i32>} : memref<1x128xf32, #tpu.memory_space<vmem>>, vector<1x128xf32>,
    } else {
    }
    return
  }
  func.func @transform_0(%arg0: i32, %arg1: i32) -> (i32, i32) {
    %c0_i32 = arith.constant 0 : i32
    return %arg1, %arg0 : i32, i32
  }
  func.func @transform_1(%arg0: i32, %arg1: i32) -> (i32, i32) {
    %c0_i32 = arith.constant 0 : i32
    %c0_i32_0 = arith.constant 0 : i32
    return %c0_i32, %arg0 : i32, i32
  }
}

</mosaic_0001>

<bundles_post_ra>
// kernel: tpu_custom_call.1
= control target key start
LH: loop header
LB: loop body
LE: loop exit
PB: predicated region body
PF: predicated region fallthrough
CT: control target
= control target key end

     0   :  { %6 = vsyncpa [#allocation4], 0  ;;  %s149_s0 = inlined_call_operand.hbm [shape: f32[8,128], index: 0, kind: input, shape index: {}]   ;;  %s150_s1 = inlined_call_operand.hbm [shape: f32[1,128], index: 1, kind: output, shape index: {}]  }
   0x1   :  { %7 = vsyncpa [#allocation5], 0  ;;  %s113_s6 = smov [#allocation3]   ;;  %s65_s10 = scalar_lea.hbm %s149_s0, 128 }
   0x2   :  { %s14_s7 = sshll.u32 %s113_s6, 4  ;;  %p66_p0 = scmp.ne.s32.totalorder %s149_s0, %s65_s10  ;;  %s15_s7 = int_to_ptr.vmem [resolvable:$true] %s14_s7 }
   0x3   :  { %p69_p1 = scmp.lt.u32.totalorder %s65_s10, %s149_s0 }
   0x5   :  { %p71_p2 = pnand %p69_p1, %p66_p0 }
   0x7   :  { %74 = shalt.err (!%p71_p2)
}
   0x8   :  { %s75_s15 = scalar_lea.vmem %s15_s7, 128  ;;  %p80_p4 = scmp.lt.s32.totalorder %s15_s7, %s15_s7 }
   0x9   :  { %p76_p3 = scmp.ne.s32.totalorder %s15_s7, %s75_s15  ;;  %p81_p5 = scmp.lt.s32.totalorder %s75_s15, %s75_s15 }
   0xb   :  { %p82_p6 = por %p81_p5, %p80_p4 }
   0xd   :  { %p83_p7 = pnand %p82_p6, %p76_p3 }
   0xf   :  { %86 = shalt.err (!%p83_p7)
}
  0x10   :  { %17 = dma.hbm_to_vmem [thread:$0]  %s149_s0, 128, %s15_s7, [#allocation4]  }
  0x11   :  { %109 = dma.done.wait [#allocation4], 128  }
  0x12   :  { %110 = vsyncadd [#allocation4], 4294967168  ;;  %v26_v0 = vld [vmem:[#allocation3] sm:$0xff]  ;;  %s114_s18 = smov [#allocation6]  }
  0x13   :  { %v27_v1 = vmul.f32 -1.0, %v26_v0  ;;  %s52_s19 = sshll.u32 %s114_s18, 4  ;;  %s53_s19 = int_to_ptr.vmem [resolvable:$true] %s52_s19 }
  0x14   :  { %s87_s20 = scalar_lea.vmem %s53_s19, 16  ;;  %s91_s0 = scalar_lea.vmem %s53_s19, 32 }
  0x15   :  { %v28_v2 = vmul.f32 1.442695, %v27_v1  ;;  %p88_p8 = scmp.ne.s32.totalorder %s53_s19, %s87_s20  ;;  %p92_p9 = scmp.lt.s32.totalorder %s53_s19, %s53_s19 }
  0x16   :  { %p93_p10 = scmp.lt.s32.totalorder %s91_s0, %s87_s20 }
  0x17   :  { %63 = vpow2.f32 %v28_v2 }
  0x18   :  { %p94_p11 = por %p93_p10, %p92_p9 }
  0x1a   :  { %p95_p12 = pnand %p94_p11, %p88_p8 }
  0x21   :  { %v64_v3 = vpop.eup %63 }
  0x22   :  { %v38_v4 = vrot.slane %v64_v3, 4 }
  0x24   :  { %v39_v5 = vadd.f32 %v64_v3, %v38_v4 }
  0x26   :  { %v40_v6 = vrot.slane %v39_v5, 2 }
  0x28   :  { %v41_v7 = vadd.f32 %v40_v6, %v39_v5 }
  0x2a   :  { %v42_v8 = vrot.slane %v41_v7, 1 }
  0x2c   :  { %v43_v9 = vadd.f32 %v42_v8, %v41_v7 }
  0x2e   :  { %v44_v10 = vmul.f32 0.0625, %v43_v9 }
  0x30   :  { %45 = vst [vmem:[#allocation6] sm:$0x1] %v44_v10 }
  0x31   :  { %98 = shalt.err (!%p95_p12)
}
  0x32   :  { %s99_s23 = scalar_lea.hbm %s150_s1, 16 }
  0x33   :  { %p100_p13 = scmp.ne.s32.totalorder %s150_s1, %s99_s23  ;;  %p103_p0 = scmp.lt.u32.totalorder %s99_s23, %s150_s1 }
  0x35   :  { %p105_p1 = pnand %p103_p0, %p100_p13 }
  0x37   :  { %108 = shalt.err (!%p105_p1)
}
  0x38   :  { %55 = dma.vmem_to_hbm [thread:$0]  %s53_s19, 16, %s150_s1, [#allocation5]  }
  0x39   :  { %111 = dma.done.wait [#allocation5], 16  }
  0x3a   :  { %112 = vsyncadd [#allocation5], 4294967280 }
  0x3b   :  { %59 = vsyncpa [#allocation4], 1 }
  0x3c   :  { %60 = vsyncpa [#allocation5], 1 }

</bundles_post_ra>
